<compile_context>
chip_gen: v7x
topology: tpu7x:2x2x1
jax: 0.10.0
libtpu: 0.0.40
codegen_flags: <defaults>
</compile_context>

<pallas_src>
import math

import jax
import jax.numpy as jnp
import numpy as np
from jax.experimental import pallas as pl
from jax.experimental.pallas import tpu as pltpu

CRAZY_NEGATIVE_VALUE = -5000.0
B_AVG = (19 + 9) / 2  # GlobalPool.b_avg


def _se_kernel(x_ref, mask_ref, scales_ref,
               w1a_ref, w1b_ref, w1c_ref, b1_ref, w2_ref, b2_ref, o_ref):
    """One grid step processes block_b batch rows.

    x_ref     : (NB, C, HW)      VMEM, input dtype
    mask_ref  : (NB, 1, HW)      VMEM, input dtype (0/1 values)
    scales_ref: (1, NB, 2)       VMEM f32  [:, :, 0] = 1/mask_sum_hw
                                           [:, :, 1] = (mask_sum_hw_sqrt - b_avg)/10
    w1a/b/c   : (SE, C)          VMEM f32 (squeeze weight split: mean / scaled-mean / max)
    b1_ref    : (SE, 1)          VMEM f32
    w2_ref    : (2C, SE)         VMEM f32
    b2_ref    : (2C, 1)          VMEM f32
    o_ref     : (NB, C, HW)      VMEM, input dtype
    """
    nb, c, _ = x_ref.shape
    xdt = x_ref.dtype

    # ---- GlobalPool (is_value_head=False), fully batched over the block ----
    sums = jnp.sum(x_ref[...].astype(jnp.float32), axis=-1)           # (NB, C) f32
    # Masked max.  For a 0/1 mask with at least one unmasked element this is
    # exactly equivalent to max(x + (1 - mask) * CRAZY_NEGATIVE_VALUE).
    raw = jnp.where(mask_ref[...] != 0, x_ref[...],
                    jnp.asarray(CRAZY_NEGATIVE_VALUE, dtype=xdt))      # (NB, C, HW)
    rmax = jnp.max(raw, axis=-1).astype(jnp.float32)                   # (NB, C)

    sc = scales_ref[0]                                                 # (NB, 2) f32
    inv_col = sc[:, 0:1]                                               # (NB, 1) = 1/mask_sum
    bsc_col = sc[:, 1:2]                                               # (NB, 1) = (sqrt-avg)/10
    mean = sums * inv_col                                              # (NB, C)
    mscaled = mean * bsc_col                                           # (NB, C)

    # ---- squeeze FC (3C -> SE) + relu, without materializing the 3C concat ----
    h1 = (jnp.einsum('sc,nc->sn', w1a_ref[...], mean,
                     preferred_element_type=jnp.float32)
          + jnp.einsum('sc,nc->sn', w1b_ref[...], mscaled,
                       preferred_element_type=jnp.float32)
          + jnp.einsum('sc,nc->sn', w1c_ref[...], rmax,
                       preferred_element_type=jnp.float32)
          + b1_ref[...])                                               # (SE, NB)
    h1 = jnp.maximum(h1, 0.0)

    # ---- excite FC (SE -> 2C), identity activation ----
    h2 = jnp.dot(w2_ref[...], h1,
                 preferred_element_type=jnp.float32) + b2_ref[...]     # (2C, NB)

    # ---- gate math hoisted out of the loop: one sigmoid, one dtype cast ----
    gate = jax.nn.sigmoid(h2[:c, :]).astype(xdt)                       # (C, NB)
    beta = h2[c:, :].astype(xdt)                                       # (C, NB)

    # ---- gating pass in the input dtype (bf16 math on bf16 inputs) ----
    for j in range(nb):                                                # static unroll
        out_j = (gate[:, j:j + 1] * x_ref[j] + beta[:, j:j + 1]) * mask_ref[j]
        o_ref[j] = out_j.astype(o_ref.dtype)


def _choose_block_b(b, c, hw, itemsize, target_bytes=4 << 20, max_block=32,
                    upper=None):
    """Pick block_b as a divisor of b (no padding, no output slicing):
    big enough to amortize the ~0.35us per-step overhead, small enough that
    the double-buffered in/out tiles fit v7x's 64 MiB VMEM, and preferring
    >= 2 grid steps so the parallel batch axis can use both v7x TensorCores."""
    per_b = max(1, c * hw * itemsize)
    cap = int(max(1, min(max_block, target_bytes // per_b, b)))
    if upper is not None:
        cap = max(1, min(cap, int(upper)))
    best_any, best_multi = 1, 0
    for d in range(1, cap + 1):
        if b % d == 0:
            best_any = d
            if b // d >= 2:
                best_multi = d
    return best_multi if best_multi else best_any


def squeeze_and_excitation(x_nchw, mask_nchw, mask_sum_hw, mask_sum_hw_sqrt,
                           w1, b1, w2, b2, *, block_b=None):
    """x_nchw: (B, C, H, W); mask_nchw: (B, 1, H, W); mask_sum*: (B,).

    Output dtype follows x_nchw.dtype (bf16 in -> bf16 out); pooling and the
    two FC layers run in f32, the gating pass runs in the input dtype.
    """
    b, c, h, w = x_nchw.shape
    hw = h * w
    se = w1.shape[0]
    itemsize = jnp.dtype(x_nchw.dtype).itemsize

    # block_b always divides b -> no jnp.pad of x/mask, no out[:b] slice.
    block_b = _choose_block_b(b, c, hw, itemsize, upper=block_b)
    nblocks = b // block_b

    # Reshape only -- no wrapper-side dtype cast of the big tensors.
    x = x_nchw.reshape(b, c, hw)
    mask = mask_nchw.reshape(b, 1, hw)

    # Tiny per-batch scale vector: [1/mask_sum, (sqrt(mask_sum) - b_avg)/10].
    inv = 1.0 / mask_sum_hw.reshape(b).astype(jnp.float32)
    bsc = (mask_sum_hw_sqrt.reshape(b).astype(jnp.float32) - B_AVG) * 0.1
    scales = jnp.stack([inv, bsc], axis=-1).reshape(nblocks, block_b, 2)

    # Small one-time weight prep (PyTorch Linear layout: (out, in)).
    w1f = w1.astype(jnp.float32)
    w1a, w1b_, w1c = w1f[:, :c], w1f[:, c:2 * c], w1f[:, 2 * c:]
    w2f = w2.astype(jnp.float32)
    b1c = b1.reshape(se, 1).astype(jnp.float32)
    b2c = b2.reshape(2 * c, 1).astype(jnp.float32)

    out = pl.pallas_call(
        _se_kernel,
        out_shape=jax.ShapeDtypeStruct((b, c, hw), x_nchw.dtype),
        grid=(nblocks,),
        in_specs=[
            pl.BlockSpec((block_b, c, hw), lambda i: (i, 0, 0)),
            pl.BlockSpec((block_b, 1, hw), lambda i: (i, 0, 0)),
            pl.BlockSpec((1, block_b, 2), lambda i: (i, 0, 0)),
            pl.BlockSpec((se, c), lambda i: (0, 0)),
            pl.BlockSpec((se, c), lambda i: (0, 0)),
            pl.BlockSpec((se, c), lambda i: (0, 0)),
            pl.BlockSpec((se, 1), lambda i: (0, 0)),
            pl.BlockSpec((2 * c, se), lambda i: (0, 0)),
            pl.BlockSpec((2 * c, 1), lambda i: (0, 0)),
        ],
        out_specs=pl.BlockSpec((block_b, c, hw), lambda i: (i, 0, 0)),
        compiler_params=pltpu.CompilerParams(
            dimension_semantics=("parallel",),
            # Above the v5e/v6e scoped defaults, comfortably below v7x's
            # 64 MiB physical VMEM for the ~4 MiB/step tiles chosen above.
            vmem_limit_bytes=48 * 1024 * 1024,
        ),
    )(x, mask, scales, w1a, w1b_, w1c, b1c, w2f, b2c)

    return out.reshape(b, c, h, w)


def _reference(x, mask, msum, msqrt, w1, b1, w2, b2):
    """Pure-JAX reference mirroring the PyTorch forward."""
    b, c, h, w = x.shape
    x = x.astype(jnp.float32)
    mask = mask.astype(jnp.float32)
    div = msum.reshape(-1, 1).astype(jnp.float32)
    div_sqrt = msqrt.reshape(-1, 1).astype(jnp.float32)
    mean = jnp.sum(x, axis=(2, 3)) / div
    b_diff = div_sqrt - B_AVG
    raw_x = x + (1.0 - mask) * CRAZY_NEGATIVE_VALUE
    rmax = jnp.max(raw_x.reshape(b, c, h * w), axis=2)
    pooled = jnp.concatenate([mean, mean * (b_diff / 10.0), rmax], axis=1)
    h1 = jnp.maximum(pooled @ w1.T + b1, 0.0)
    h2 = h1 @ w2.T + b2
    gammas, betas = h2[:, :c], h2[:, c:]
    out = jax.nn.sigmoid(gammas)[:, :, None, None] * x + betas[:, :, None, None]
    return out * mask


if __name__ == "__main__":
    B, C, H, W = 2, 4, 16, 16
    SE = 8

    key = jax.random.PRNGKey(0)
    kx, km, kw1, kw2 = jax.random.split(key, 4)

    x = jax.random.normal(kx, (B, C, H, W), dtype=jnp.float32)

    mask = (jax.random.uniform(km, (B, 1, H, W)) > 0.2).astype(jnp.float32)
    mask = mask.at[:, :, 0, 0].set(1.0)  # guarantee non-empty mask
    mask_sum_hw = jnp.sum(mask, axis=(1, 2, 3))          # (B,)
    mask_sum_hw_sqrt = jnp.sqrt(mask_sum_hw)             # (B,)

    # Deterministic parameter init (xavier-normal style, as in FullyConnect).
    gain_sq = math.sqrt(2.0)  # relu gain for squeeze
    gain_ex = 1.0             # identity gain for excite
    std1 = gain_sq * math.sqrt(2.0 / (3 * C + SE))
    std2 = gain_ex * math.sqrt(2.0 / (SE + 2 * C))
    w1 = jax.random.normal(kw1, (SE, 3 * C), dtype=jnp.float32) * std1
    b1 = jnp.zeros((SE,), dtype=jnp.float32)
    w2 = jax.random.normal(kw2, (2 * C, SE), dtype=jnp.float32) * std2
    b2 = jnp.zeros((2 * C,), dtype=jnp.float32)

    # ---- f32 I/O: strict check against the reference ----
    out = squeeze_and_excitation(x, mask, mask_sum_hw, mask_sum_hw_sqrt,
                                 w1, b1, w2, b2)
    out = jax.block_until_ready(out)
    ref = _reference(x, mask, mask_sum_hw, mask_sum_hw_sqrt, w1, b1, w2, b2)
    np.testing.assert_allclose(np.asarray(out), np.asarray(ref),
                               rtol=5e-5, atol=5e-5)

    # ---- bf16 I/O: same kernel, half the HBM traffic, bf16 gating math ----
    x_bf = x.astype(jnp.bfloat16)
    mask_bf = mask.astype(jnp.bfloat16)
    out_bf = squeeze_and_excitation(x_bf, mask_bf, mask_sum_hw, mask_sum_hw_sqrt,
                                    w1, b1, w2, b2)
    out_bf = jax.block_until_ready(out_bf)
    ref_bf = _reference(x_bf.astype(jnp.float32), mask, mask_sum_hw,
                        mask_sum_hw_sqrt, w1, b1, w2, b2)
    np.testing.assert_allclose(np.asarray(out_bf.astype(jnp.float32)),
                               np.asarray(ref_bf), rtol=2e-2, atol=2e-2)

    print("KERNEL_OK")
</pallas_src>

<mosaic_0001>
module attributes {stable_mosaic.version = 11 : i64} {
  func.func @_se_kernel(%arg0: i32, %arg1: memref<1x4x256xf32, #tpu.memory_space<vmem>>, %arg2: memref<1x1x256xf32, #tpu.memory_space<vmem>>, %arg3: memref<1x1x2xf32, #tpu.memory_space<vmem>>, %arg4: memref<8x4xf32, #tpu.memory_space<vmem>>, %arg5: memref<8x4xf32, #tpu.memory_space<vmem>>, %arg6: memref<8x4xf32, #tpu.memory_space<vmem>>, %arg7: memref<8x1xf32, #tpu.memory_space<vmem>>, %arg8: memref<8x8xf32, #tpu.memory_space<vmem>>, %arg9: memref<8x1xf32, #tpu.memory_space<vmem>>, %arg10: memref<1x4x256xf32, #tpu.memory_space<vmem>>) attributes {dimension_semantics = [#tpu.dimension_semantics<parallel>], iteration_bounds = array<i64: 2>, scalar_prefetch = 0 : i64, scratch_operands = 0 : i64, tpu.core_type = #tpu.core_type<tc>, window_params = [{transform_indices = @transform_0, window_bounds = array<i64: 1, 4, 256>}, {transform_indices = @transform_1, window_bounds = array<i64: 1, 1, 256>}, {transform_indices = @transform_2, window_bounds = array<i64: 1, 1, 2>}, {pipeline_mode = #tpu.pipeline_mode<synchronous>, transform_indices = @transform_3, window_bounds = array<i64: 8, 4>}, {pipeline_mode = #tpu.pipeline_mode<synchronous>, transform_indices = @transform_4, window_bounds = array<i64: 8, 4>}, {pipeline_mode = #tpu.pipeline_mode<synchronous>, transform_indices = @transform_5, window_bounds = array<i64: 8, 4>}, {pipeline_mode = #tpu.pipeline_mode<synchronous>, transform_indices = @transform_6, window_bounds = array<i64: 8, 1>}, {pipeline_mode = #tpu.pipeline_mode<synchronous>, transform_indices = @transform_7, window_bounds = array<i64: 8, 8>}, {pipeline_mode = #tpu.pipeline_mode<synchronous>, transform_indices = @transform_8, window_bounds = array<i64: 8, 1>}, {transform_indices = @transform_9, window_bounds = array<i64: 1, 4, 256>}]} {
    %c0 = arith.constant 0 : index
    %c0_0 = arith.constant 0 : index
    %c0_1 = arith.constant 0 : index
    %0 = vector.load %arg1[%c0, %c0_0, %c0_1] : memref<1x4x256xf32, #tpu.memory_space<vmem>>, vector<1x4x256xf32>
    %cst = arith.constant dense<0.000000e+00> : vector<1x4xf32>
    %1 = vector.multi_reduction <add>, %0, %cst [2] : vector<1x4x256xf32> to vector<1x4xf32>
    %c0_2 = arith.constant 0 : index
    %c0_3 = arith.constant 0 : index
    %c0_4 = arith.constant 0 : index
    %2 = vector.load %arg2[%c0_2, %c0_3, %c0_4] : memref<1x1x256xf32, #tpu.memory_space<vmem>>, vector<1x1x256xf32>
    %cst_5 = arith.constant 0.000000e+00 : f32
    %3 = vector.broadcast %cst_5 : f32 to vector<1x1x256xf32>
    %4 = arith.cmpf one, %2, %3 : vector<1x1x256xf32>
    %c0_6 = arith.constant 0 : index
    %c0_7 = arith.constant 0 : index
    %c0_8 = arith.constant 0 : index
    %5 = vector.load %arg1[%c0_6, %c0_7, %c0_8] : memref<1x4x256xf32, #tpu.memory_space<vmem>>, vector<1x4x256xf32>
    %cst_9 = arith.constant -5.000000e+03 : f32
    %6 = vector.shape_cast %4 : vector<1x1x256xi1> to vector<1x1x256xi1>
    %7 = vector.broadcast %6 : vector<1x1x256xi1> to vector<1x4x256xi1>
    %8 = vector.broadcast %cst_9 : f32 to vector<1x4x256xf32>
    %9 = arith.select %7, %5, %8 : vector<1x4x256xi1>, vector<1x4x256xf32>
    %cst_10 = arith.constant dense<0xFF800000> : vector<1x4xf32>
    %10 = vector.multi_reduction <maximumf>, %9, %cst_10 [2] : vector<1x4x256xf32> to vector<1x4xf32>
    %c0_11 = arith.constant 0 : index
    %c0_12 = arith.constant 0 : index
    %c0_13 = arith.constant 0 : index
    %11 = vector.load %arg3[%c0_11, %c0_12, %c0_13] : memref<1x1x2xf32, #tpu.memory_space<vmem>>, vector<1x1x2xf32>
    %12 = vector.shape_cast %11 : vector<1x1x2xf32> to vector<1x2xf32>
    %13 = vector.extract_strided_slice %12 {offsets = [0, 0], sizes = [1, 1], strides = [1, 1]} : vector<1x2xf32> to vector<1x1xf32>
    %14 = vector.extract_strided_slice %12 {offsets = [0, 1], sizes = [1, 1], strides = [1, 1]} : vector<1x2xf32> to vector<1x1xf32>
    %15 = vector.broadcast %13 : vector<1x1xf32> to vector<1x4xf32>
    %16 = arith.mulf %1, %15 : vector<1x4xf32>
    %17 = vector.broadcast %14 : vector<1x1xf32> to vector<1x4xf32>
    %18 = arith.mulf %16, %17 : vector<1x4xf32>
    %c0_14 = arith.constant 0 : index
    %c0_15 = arith.constant 0 : index
    %19 = vector.load %arg4[%c0_14, %c0_15] : memref<8x4xf32, #tpu.memory_space<vmem>>, vector<8x4xf32>
    "tpu.trace_start"() <{level = 10 : i32, message = "sc,nc->sn"}> : () -> ()
    %cst_16 = arith.constant dense<0.000000e+00> : vector<8x1xf32>
    %20 = tpu.matmul %19, %16, %cst_16 {dimension_numbers = #tpu.dot_dimension_numbers<[1], [1], [0], [0], [0, 0, 1, 0], [], []>} : vector<8x4xf32>, vector<1x4xf32>, vector<8x1xf32> -> vector<8x1xf32>
    "tpu.trace_stop"() : () -> ()
    %c0_17 = arith.constant 0 : index
    %c0_18 = arith.constant 0 : index
    %21 = vector.load %arg5[%c0_17, %c0_18] : memref<8x4xf32, #tpu.memory_space<vmem>>, vector<8x4xf32>
    "tpu.trace_start"() <{level = 10 : i32, message = "sc,nc->sn"}> : () -> ()
    %cst_19 = arith.constant dense<0.000000e+00> : vector<8x1xf32>
    %22 = tpu.matmul %21, %18, %cst_19 {dimension_numbers = #tpu.dot_dimension_numbers<[1], [1], [0], [0], [0, 0, 1, 0], [], []>} : vector<8x4xf32>, vector<1x4xf32>, vector<8x1xf32> -> vector<8x1xf32>
    "tpu.trace_stop"() : () -> ()
    %23 = arith.addf %20, %22 : vector<8x1xf32>
    %c0_20 = arith.constant 0 : index
    %c0_21 = arith.constant 0 : index
    %24 = vector.load %arg6[%c0_20, %c0_21] : memref<8x4xf32, #tpu.memory_space<vmem>>, vector<8x4xf32>
    "tpu.trace_start"() <{level = 10 : i32, message = "sc,nc->sn"}> : () -> ()
    %cst_22 = arith.constant dense<0.000000e+00> : vector<8x1xf32>
    %25 = tpu.matmul %24, %10, %cst_22 {dimension_numbers = #tpu.dot_dimension_numbers<[1], [1], [0], [0], [0, 0, 1, 0], [], []>} : vector<8x4xf32>, vector<1x4xf32>, vector<8x1xf32> -> vector<8x1xf32>
    "tpu.trace_stop"() : () -> ()
    %26 = arith.addf %23, %25 : vector<8x1xf32>
    %c0_23 = arith.constant 0 : index
    %c0_24 = arith.constant 0 : index
    %27 = vector.load %arg7[%c0_23, %c0_24] : memref<8x1xf32, #tpu.memory_space<vmem>>, vector<8x1xf32>
    %28 = arith.addf %26, %27 : vector<8x1xf32>
    %cst_25 = arith.constant 0.000000e+00 : f32
    %29 = vector.broadcast %cst_25 : f32 to vector<8x1xf32>
    %30 = arith.maximumf %28, %29 : vector<8x1xf32>
    %c0_26 = arith.constant 0 : index
    %c0_27 = arith.constant 0 : index
    %31 = vector.load %arg8[%c0_26, %c0_27] : memref<8x8xf32, #tpu.memory_space<vmem>>, vector<8x8xf32>
    %cst_28 = arith.constant dense<0.000000e+00> : vector<8x1xf32>
    %32 = tpu.matmul %31, %30, %cst_28 {dimension_numbers = #tpu.dot_dimension_numbers<[1], [0], [0], [1], [0, 0, 1, 1], [], []>} : vector<8x8xf32>, vector<8x1xf32>, vector<8x1xf32> -> vector<8x1xf32>
    %c0_29 = arith.constant 0 : index
    %c0_30 = arith.constant 0 : index
    %33 = vector.load %arg9[%c0_29, %c0_30] : memref<8x1xf32, #tpu.memory_space<vmem>>, vector<8x1xf32>
    %34 = arith.addf %32, %33 : vector<8x1xf32>
    %35 = vector.extract_strided_slice %34 {offsets = [0, 0], sizes = [4, 1], strides = [1, 1]} : vector<8x1xf32> to vector<4x1xf32>
    %36 = arith.negf %35 : vector<4x1xf32>
    %37 = math.exp %36 : vector<4x1xf32>
    %cst_31 = arith.constant 1.000000e+00 : f32
    %38 = vector.broadcast %cst_31 : f32 to vector<4x1xf32>
    %39 = arith.addf %38, %37 : vector<4x1xf32>
    %40 = arith.divf %38, %39 : vector<4x1xf32>
    %41 = vector.extract_strided_slice %34 {offsets = [4, 0], sizes = [4, 1], strides = [1, 1]} : vector<8x1xf32> to vector<4x1xf32>
    %c0_32 = arith.constant 0 : index
    %c0_33 = arith.constant 0 : index
    %c0_34 = arith.constant 0 : index
    %42 = vector.load %arg1[%c0_32, %c0_33, %c0_34] : memref<1x4x256xf32, #tpu.memory_space<vmem>>, vector<1x4x256xf32>
    %43 = vector.shape_cast %42 : vector<1x4x256xf32> to vector<4x256xf32>
    %44 = vector.broadcast %40 : vector<4x1xf32> to vector<4x256xf32>
    %45 = arith.mulf %44, %43 : vector<4x256xf32>
    %46 = vector.broadcast %41 : vector<4x1xf32> to vector<4x256xf32>
    %47 = arith.addf %45, %46 : vector<4x256xf32>
    %c0_35 = arith.constant 0 : index
    %c0_36 = arith.constant 0 : index
    %c0_37 = arith.constant 0 : index
    %48 = vector.load %arg2[%c0_35, %c0_36, %c0_37] : memref<1x1x256xf32, #tpu.memory_space<vmem>>, vector<1x1x256xf32>
    %49 = vector.shape_cast %48 : vector<1x1x256xf32> to vector<1x256xf32>
    %50 = vector.broadcast %49 : vector<1x256xf32> to vector<4x256xf32>
    %51 = arith.mulf %47, %50 : vector<4x256xf32>
    %c0_38 = arith.constant 0 : index
    %c0_39 = arith.constant 0 : index
    %c0_40 = arith.constant 0 : index
    %52 = vector.load %arg10[%c0_38, %c0_39, %c0_40] : memref<1x4x256xf32, #tpu.memory_space<vmem>>, vector<1x4x256xf32>
    %53 = vector.shape_cast %52 : vector<1x4x256xf32> to vector<4x256xf32>
    %54 = vector.shape_cast %51 : vector<4x256xf32> to vector<1x4x256xf32>
    tpu.vector_store %arg10[%c0_38, %c0_39, %c0_40], %54 {strides = array<i32>} : memref<1x4x256xf32, #tpu.memory_space<vmem>>, vector<1x4x256xf32>,
    return
  }
  func.func @transform_0(%arg0: i32) -> (i32, i32, i32) {
    %c0_i32 = arith.constant 0 : i32
    %c0_i32_0 = arith.constant 0 : i32
    %c0_i32_1 = arith.constant 0 : i32
    return %arg0, %c0_i32, %c0_i32_0 : i32, i32, i32
  }
  func.func @transform_1(%arg0: i32) -> (i32, i32, i32) {
    %c0_i32 = arith.constant 0 : i32
    %c0_i32_0 = arith.constant 0 : i32
    %c0_i32_1 = arith.constant 0 : i32
    return %arg0, %c0_i32, %c0_i32_0 : i32, i32, i32
  }
  func.func @transform_2(%arg0: i32) -> (i32, i32, i32) {
    %c0_i32 = arith.constant 0 : i32
    %c0_i32_0 = arith.constant 0 : i32
    %c0_i32_1 = arith.constant 0 : i32
    return %arg0, %c0_i32, %c0_i32_0 : i32, i32, i32
  }
  func.func @transform_3(%arg0: i32) -> (i32, i32) {
    %c0_i32 = arith.constant 0 : i32
    %c0_i32_0 = arith.constant 0 : i32
    %c0_i32_1 = arith.constant 0 : i32
    return %c0_i32, %c0_i32_0 : i32, i32
  }
  func.func @transform_4(%arg0: i32) -> (i32, i32) {
    %c0_i32 = arith.constant 0 : i32
    %c0_i32_0 = arith.constant 0 : i32
    %c0_i32_1 = arith.constant 0 : i32
    return %c0_i32, %c0_i32_0 : i32, i32
  }
  func.func @transform_5(%arg0: i32) -> (i32, i32) {
    %c0_i32 = arith.constant 0 : i32
    %c0_i32_0 = arith.constant 0 : i32
    %c0_i32_1 = arith.constant 0 : i32
    return %c0_i32, %c0_i32_0 : i32, i32
  }
  func.func @transform_6(%arg0: i32) -> (i32, i32) {
    %c0_i32 = arith.constant 0 : i32
    %c0_i32_0 = arith.constant 0 : i32
    %c0_i32_1 = arith.constant 0 : i32
    return %c0_i32, %c0_i32_0 : i32, i32
  }
  func.func @transform_7(%arg0: i32) -> (i32, i32) {
    %c0_i32 = arith.constant 0 : i32
    %c0_i32_0 = arith.constant 0 : i32
    %c0_i32_1 = arith.constant 0 : i32
    return %c0_i32, %c0_i32_0 : i32, i32
  }
  func.func @transform_8(%arg0: i32) -> (i32, i32) {
    %c0_i32 = arith.constant 0 : i32
    %c0_i32_0 = arith.constant 0 : i32
    %c0_i32_1 = arith.constant 0 : i32
    return %c0_i32, %c0_i32_0 : i32, i32
  }
  func.func @transform_9(%arg0: i32) -> (i32, i32, i32) {
    %c0_i32 = arith.constant 0 : i32
    %c0_i32_0 = arith.constant 0 : i32
    %c0_i32_1 = arith.constant 0 : i32
    return %arg0, %c0_i32, %c0_i32_0 : i32, i32, i32
  }
}

</mosaic_0001>

<bundles_post_ra>
// kernel: tpu_custom_call.1
= control target key start
LH: loop header
LB: loop body
LE: loop exit
PB: predicated region body
PF: predicated region fallthrough
CT: control target
= control target key end

     0   :  { %14 = vsyncpa [#allocation3], 0  ;;  %s1050_s0 = inlined_call_operand.vmem [shape: f32[2,4,256], index: 0, kind: input, shape index: {}]   ;;  %s1051_s1 = inlined_call_operand.vmem [shape: f32[2,1,256], index: 1, kind: input, shape index: {}]   ;;  %s1052_s2 = inlined_call_operand.vmem [shape: f32[2,1,2], index: 2, kind: input, shape index: {}]   ;;  %s1053_s3 = inlined_call_operand.vmem [shape: f32[8,4], index: 3, kind: input, shape index: {}]   ;;  %s1054_s4 = inlined_call_operand.vmem [shape: f32[8,4], index: 4, kind: input, shape index: {}]   ;;  %s1055_s5 = inlined_call_operand.vmem [shape: f32[8,4], index: 5, kind: input, shape index: {}]   ;;  %s1056_s6 = inlined_call_operand.vmem [shape: f32[8,1], index: 6, kind: input, shape index: {}]   ;;  %s1057_s7 = inlined_call_operand.vmem [shape: f32[8,8], index: 7, kind: input, shape index: {}]   ;;  %s1058_s8 = inlined_call_operand.vmem [shape: f32[8,1], index: 8, kind: input, shape index: {}]   ;;  %s1059_s9 = inlined_call_operand.hbm [shape: f32[2,4,256], index: 9, kind: output, shape index: {}]  }
   0x1   :  { %16 = vsyncpa [#allocation3 + $0x1], 0  ;;  %s886_s30 = smov 0   ;;  %s888_s10 = smov 0  }
   0x2   :  { %s890_s11 = smov 0   ;;  %s892_s12 = smov 0  }
   0x3 LB: > { %s907_s13 = sadd.s32 4294967295, %s829_s12   ;;  %s692_s14 = sadd.s32 4294967294, %s829_s12   ;;  %s829_s12 = sphi %s892_s12, %s1065_s12   ;;  %s825_s11 = sphi %s890_s11, %s1064_s11   ;;  %s821_s10 = sphi %s888_s10, %s1063_s10   ;;  %s817_s30 = sphi %s886_s30, %s1062_s30  }
   0x4   : > { %s911_s15 = sadd.s32 1, %s829_s12   ;;  %s233_s16 = sadd.s32 1, %s825_s11 }
   0x5   : > { %s230_s17 = ssub.s32 %s829_s12, %s911_s15  ;;  %p243_p0 = scmp.ne.s32.totalorder %s825_s11, %s821_s10 }
   0x6   : > { %p231_p1 = scmp.eq.s32.totalorder %s230_s17, 0  ;;  %p244_p2 = scmp.eq.s32.totalorder %s907_s13, 1 }
   0x7   : > { %p249_p3 = scmp.ne.s32.totalorder %s821_s10, %s817_s30  ;;  %p250_p4 = scmp.eq.s32.totalorder %s692_s14, 1 }
   0x8   : > { %s922_s18 = scalar_select %p231_p1, %s825_s11, %s233_s16  }
   0x9   : > { %p924_p5 = por %p244_p2, %p243_p0  ;;  %p928_p6 = por %p250_p4, %p249_p3 }
   0xa   : > { %p695_p7 = scmp.ge.s32.totalorder %s829_s12, 1  ;;  %p307_p8 = scmp.lt.s32.totalorder %s829_s12, 3 }
   0xc   : > { %p308_p9 = pnand %p695_p7, %p307_p8 }
   0xd   : > { %p350_p10 = scmp.lt.s32.totalorder (!%p308_p9), %s907_s13, 1  ;;  %v375_v0 = vlaneseq (!%p308_p9)  ;;  %v831_v1 = vmov (!%p308_p9), 0   ;;  %v832_v2 = vmov (!%p308_p9), 1   ;;  %vm366_vm0 = vcmask (!%p308_p9), 1043456   ;;  %v412_v30 = vld [vmem:[%s1053_s3] sm:$0xff] (!%p308_p9)  ;;  %s708_s24 = sshll.u32 (!%p308_p9), %s907_s13, 7 }
   0xe   : > { %311 = sbr.rel (%p308_p9) target bundleno = 739 (0x2e3), region = 56  ;;  %759 = vset.pattern.permute.xlu0 (!%p308_p9), %v831_v1  ;;  %760 = vset.pattern.permute.xlu1 (!%p308_p9), %v832_v2  ;;  %v413_v33 = vld [vmem:[%s1054_s4] sm:$0xff] (!%p308_p9)  ;;  %vm435_vm4 = vcmask (!%p308_p9), 31744   ;;  %v833_v43 = vmov (!%p308_p9), 0.0   ;;  %vm834_vm5 = vmmov (!%p308_p9), 0   ;;  %vm479_vm6 = vcmask (!%p308_p9), 64512   ;;  %s1008_s28 = scalar_lea.hbm (!%p308_p9), %s1059_s9, %s708_s24 }
   0xf   : > { %v938_v3 = vshrl.u32 (!%p308_p9), %v375_v0, 7  ;;  %v416_v20 = vand.u32 (!%p308_p9), 127, %v375_v0  ;;  %v456_v37 = vld [vmem:[%s1055_s5] sm:$0xff] (!%p308_p9)  ;;  %711 = vmatprep.subr.mxu0 (!%p308_p9), %v833_v43  ;;  %713 = vmatprep.mubr.msk.f32.mxu0 (!%p308_p9), %vm834_vm5, %v833_v43 }
  0x10   : > { %v474_v48 = vld [vmem:[%s1056_s6] sm:$0xff] (!%p308_p9) }
  0x11   : > { %v951_v4 = vsub.s32 (!%p308_p9), 0, %v938_v3  ;;  %v381_v5 = vsub.s32 (!%p308_p9), 1, %v938_v3  ;;  %v419_v21 = vsub.s32 (!%p308_p9), %v416_v20, %v938_v3  ;;  %v477_v52 = vld [vmem:[%s1057_s7] sm:$0xff] (!%p308_p9) }
  0x12   : > { %v478_v53 = vld [vmem:[%s1058_s8] sm:$0xff] (!%p308_p9) }
  0x15   : > { %s936_s21 = scalar_select %p350_p10, %s907_s13, 1 }
  0x16   : > { %s835_s13 = smov [#allocation2]  }
  0x17   : > { %s707_s22 = sshll.u32 %s936_s21, 3  ;;  %s699_s23 = sshll.u32 %s936_s21, 1 }
  0x18   : > { %s354_s26 = scalar_lea.vmem %s1050_s0, %s707_s22  ;;  %s948_s29 = scalar_lea.vmem %s1051_s1, %s699_s23 }
  0x19   : > { %v954_v6 = vld [vmem:[%s354_s26] sm:$0xff]  ;;  %s361_s17 = scalar_lea.vmem %s1052_s2, %s936_s21  ;;  %s347_s23 = sand.u32 1, %s821_s10  }
  0x1a   : > { %v372_v7 = vld [vmem:[%s948_s29] sm:$0x3]  ;;  %v959_v8 = vcombine.high %v954_v6, %v954_v6  ;;  %v367_v9 = vsel %vm366_vm0, %v954_v6, 0.0  ;;  %s696_s21 = sshll.u32 %s347_s23, 3  ;;  %s598_s14 = scalar_lea.sflag [#allocation3], %s347_s23 }
  0x1b   : > { %vm373_vm1 = vcmp.ne.f32.partialorder %v372_v7, 0.0  ;;  %v392_v22 = vld [vmem:[%s361_s17] sm:$0x1]  ;;  %s349_s25 = scalar_lea.vmem [#allocation2], %s696_s21  ;;  %s771_s17 = sshll.u32 %s835_s13, 4  ;;  %s772_s17 = int_to_ptr.vmem [resolvable:$false] %s771_s17 }
  0x1c   : > { %v374_v10 = vsel %vm373_vm1, 1, %v831_v1  ;;  %v368_v11 = vsel %vm366_vm0, %v959_v8, 0.0  ;;  %v578_v62 = vld [vmem:[%s948_s29] sm:$0x3]  ;;  %s612_s26 = sshll.u32 %s349_s25, 4  ;;  %s773_s22 = scalar_lea.vmem %s772_s17, 256  ;;  %s1010_s26 = int_to_ptr.vmem [resolvable:$true] %s612_s26 }
  0x1d   : > { %v378_v12 = vrot.slane %v374_v10, %v951_v4  ;;  %v382_v13 = vrot.slane %v374_v10, %v381_v5  ;;  %v369_v14 = vadd.f32 %v368_v11, %v367_v9  ;;  %v583_v63 = vrot.slane %v578_v62, %v951_v4  ;;  %s767_s16 = scalar_lea.vmem %s1010_s26, 128  ;;  %p774_p0 = scmp.lt.s32.totalorder %s1010_s26, %s772_s17 }
  0x1e   : > { %v587_v7 = vrot.slane %v578_v62, %v381_v5  ;;  %p768_p11 = scmp.ne.s32.totalorder %s1010_s26, %s767_s16  ;;  %p775_p1 = scmp.lt.s32.totalorder %s773_s22, %s767_s16 }
  0x1f   : > { %vm383_vm2 = vcmp.eq.s32.totalorder %v378_v12, 1  ;;  %vm384_vm3 = vcmp.eq.s32.totalorder %v382_v13, 1  ;;  %370 = vadd.xlane.f32.xlu0 %v369_v14 }
  0x20   : > { %v385_v15 = vsel %vm383_vm2, %v954_v6, -5000.0  ;;  %v386_v16 = vsel %vm384_vm3, %v959_v8, -5000.0  ;;  %p769_p12 = pnand %p768_p11, %p924_p5  ;;  %p776_p2 = por %p775_p1, %p774_p0 }
  0x21   : > { %v387_v17 = vsel %vm366_vm0, %v385_v15, -inf  ;;  %v388_v18 = vsel %vm366_vm0, %v386_v16, -inf }
  0x22   : > { %v389_v19 = vmax.f32 %v387_v17, %v388_v18  ;;  %p770_p13 = pneg %p769_p12 }
  0x24   : > { %390 = vmax.xlane.f32.xlu1 %v389_v19  ;;  %p777_p3 = pnand %p776_p2, %p770_p13 }
  0x35   : > { %404 = vperm.xlu1 %760, %v392_v22   ;;  %395 = vperm.xlu0 %759, %v392_v22  }
  0x39   : > { %761 = vset.pattern.permute.xlu1 %v831_v1 }
  0xac   : > { %v371_v23 = vpop.xlane.xlu0 %370 }
  0xb1   : > { %v391_v24 = vpop.xlane.xlu1 %390 }
  0xb2   : > { %v461_v34 = vrot.slane %v391_v24, %v419_v21 }
  0xb4   : > { %v396_v25 = vpop.permute.xlu0 %395  ;;  %v469_v41 = vmul.f32 %v461_v34, %v456_v37 }
  0xb5   : > { %v405_v26 = vpop.permute.xlu1 %404  ;;  %v401_v27 = vrot.slane %v396_v25, %v951_v4 }
  0xb6   : > { %v410_v28 = vrot.slane %v405_v26, %v951_v4  ;;  %v470_v42 = vsel %vm435_vm4, %v469_v41, 0.0 }
  0xb7   : > { %v402_v29 = vmul.f32 %v401_v27, %v371_v23 }
  0xb9   : > { %v411_v31 = vmul.f32 %v410_v28, %v402_v29  ;;  %v443_v32 = vrot.slane %v402_v29, %v419_v21 }
  0xbb   : > { %v451_v35 = vmul.f32 %v443_v32, %v412_v30  ;;  %v420_v36 = vrot.slane %v411_v31, %v419_v21 }
  0xbd   : > { %v452_v38 = vsel %vm435_vm4, %v451_v35, 0.0  ;;  %v434_v39 = vmul.f32 %v420_v36, %v413_v33 }
  0xbe   : > { %453 = vadd.xlane.f32.xlu0 %v452_v38 }
  0xbf   : > { %v436_v40 = vsel %vm435_vm4, %v434_v39, 0.0 }
  0xc0   : > { %437 = vadd.xlane.f32.xlu1 %v436_v40 }
  0xc4   : > { %471 = vadd.xlane.f32.xlu1 %v470_v42 }
 0x14b   : > { %v454_v45 = vpop.xlane.xlu0 %453 }
 0x14d   : > { %v438_v44 = vpop.xlane.xlu1 %437 }
 0x14e   : > { %v455_v46 = vadd.f32 %v454_v45, %v438_v44 }
 0x151   : > { %v472_v47 = vpop.xlane.xlu1 %471 }
 0x152   : > { %v473_v49 = vadd.f32 %v472_v47, %v455_v46 }
 0x154   : > { %v475_v50 = vadd.f32 %v474_v48, %v473_v49 }
 0x156   : > { %v476_v51 = vmax.f32 %v475_v50, 0.0 }
 0x158   : > { %712 = vmatpush3.msra.mxu0 %v476_v51 }
 0x159   : > { %714 = vmatmul.mubr.msk.f32.vlgmr.msra.gmra.mrb[0].mxu0 %vm479_vm6, %v477_v52 }
 0x22c   : > { %v549_v54 = vpop.f32.mrb[0].mxu0 }
 0x22d   : > { %v550_v55 = vadd.f32 %v549_v54, %v478_v53  ;;  %v715_v56 = vpop.f32.mrb[1].mxu0 }
 0x22f   : > { %v701_v57 = vmul.f32 -1.442695, %v550_v55 }
 0x231   : > { %763 = vpow2.f32 %v701_v57 }
 0x23b   : > { %v764_v58 = vpop.eup %763 }
 0x23c   : > { %v556_v59 = vadd.f32 1.0, %v764_v58 }
 0x23e   : > { %765 = vrcp.f32 %v556_v59 }
 0x248   : > { %v766_v60 = vpop.eup %765 }
 0x249   : > { %562 = vperm.xlu1 %761, %v766_v60  }
 0x24d   : > { %572 = vperm.xlu1 %761, %v550_v55  }
 0x2c8   : > { %v563_v61 = vpop.permute.xlu1 %562 }
 0x2c9   : > { %v568_v1 = vmul.f32 %v563_v61, %v954_v6  ;;  %v569_v2 = vmul.f32 %v563_v61, %v959_v8 }
 0x2cc   : > { %v573_v0 = vpop.permute.xlu1 %572 }
 0x2cd   : > { %v574_v9 = vrot.slane %v573_v0, 4 }
 0x2cf   : > { %v576_v10 = vadd.f32 %v574_v9, %v568_v1  ;;  %v577_v11 = vadd.f32 %v574_v9, %v569_v2 }
 0x2d1   : > { %v590_v12 = vmul.f32 %v583_v63, %v576_v10  ;;  %v591_v13 = vmul.f32 %v587_v7, %v577_v11 }
 0x2d3   : > { %v594_v14 = vcombine.low %v590_v12, %v591_v13 }
 0x2d5   : > { %596 = vst [vmem:[%s349_s25] sm:$0xff] %v594_v14 }
 0x2d6   : > { %780 = shalt.err (!%p777_p3)
}
 0x2d7   : > { %s781_s23 = scalar_lea.hbm %s1008_s28, 128  ;;  %s785_s25 = scalar_lea.hbm %s1059_s9, 256 }
 0x2d8   : > { %p782_p4 = scmp.ne.s32.totalorder %s1008_s28, %s781_s23  ;;  %p786_p9 = scmp.lt.u32.totalorder %s1008_s28, %s1059_s9 }
 0x2d9   : > { %p787_p10 = scmp.lt.u32.totalorder %s785_s25, %s781_s23  ;;  %p789_p12 = scmp.lt.u32.totalorder %s781_s23, %s1008_s28 }
 0x2da   : > { %p783_p7 = pnand %p782_p4, %p924_p5 }
 0x2db   : > { %p788_p11 = por %p787_p10, %p786_p9 }
 0x2dc   : > { %p784_p8 = pneg %p783_p7 }
 0x2dd   : > { %p790_p13 = por %p789_p12, %p788_p11 }
 0x2df   : > { %p791_p0 = pnand %p790_p13, %p784_p8 }
 0x2e1   : > { %794 = shalt.err (!%p791_p0)
}
 0x2e2   : > { %716 = dma.vmem_to_hbm [thread:$0]  (%p924_p5), %s1010_s26, 128, %s1008_s28, %s598_s14  }
 0x2e3 PF: > { %p722_p1 = scmp.ge.s32.totalorder %s829_s12, 2  ;;  %s624_s16 = sand.u32 1, %s817_s30  }
 0x2e4   : > { %s625_s13 = scalar_lea.sflag [#allocation3], %s624_s16 }
 0x2e5   : > { %p719_p2 = pnand %p722_p1, %p928_p6 }
 0x2e7   : > { %812 = dma.done.wait (!%p719_p2), %s625_s13, 128  }
 0x2e8   : > { %814 = vsyncadd (!%p719_p2), %s625_s13, 4294967168  ;;  %p19_p3 = scmp.ge.s32.totalorder %s911_s15, 4   ;;  %s1062_s30 = smov %s821_s10 }
 0x2e9   : > { %s1063_s10 = smov %s825_s11  ;;  %s1064_s11 = smov %s922_s18 }
 0x2ea   : > { %s1065_s12 = smov %s911_s15  ;;  %21 = sbr.rel (!%p19_p3) target bundleno = 3 (0x3), region = 97 }
 0x2f1   :  { %630 = vsyncpa [#allocation3], 1 }
 0x2f2   :  { %632 = vsyncpa [#allocation3 + $0x1], 1 }

</bundles_post_ra>
